<compile_context>
chip_gen: v5e
topology: v5e:2x2
jax: 0.10.0
libtpu: 0.0.40
codegen_flags: <defaults>
</compile_context>

<pallas_src>
import functools
import math

import jax
import jax.numpy as jnp
from jax.experimental import pallas as pl
from jax.experimental.pallas import tpu as pltpu


def _round_up(x, m):
    return ((x + m - 1) // m) * m


# ---------------------------------------------------------------------------
# pltpu.roll direction probe (one tiny kernel, cached): makes the segmented
# sliding-window math robust to the roll sign convention.
# ---------------------------------------------------------------------------
@functools.lru_cache(maxsize=None)
def _roll_like_jnp():
    """True iff pltpu.roll(x, s)[i] == x[(i - s) % L] (jnp.roll convention)."""
    def probe(x_ref, o_ref):
        o_ref[...] = pltpu.roll(x_ref[...], 1, axis=1)

    x = jax.lax.broadcasted_iota(jnp.float32, (8, 128), 1)
    with jax.ensure_compile_time_eval():
        out = pl.pallas_call(
            probe, out_shape=jax.ShapeDtypeStruct((8, 128), jnp.float32))(x)
        return bool(out[0, 0] == 127.0)


# ---------------------------------------------------------------------------
# Pallas kernel: masked cross-entropy over a lane-packed tile of rows.
# pred/true blocks are (tile_p, L) with L = rpp*d (multiple of 128); each group of d
# consecutive lanes is one logical row.  Per-row reductions via d-1 static lane rolls.
# ---------------------------------------------------------------------------
def _masked_ce_kernel(pred_ref, true_ref, ce_ref, ct_ref, *,
                      n_rows, d, rpp, tile_p, nblocks, steps_per_par,
                      roll_like_jnp):
    k = pl.program_id(1)

    @pl.when(k == 0)
    def _():
        ce_ref[...] = jnp.zeros_like(ce_ref)
        ct_ref[...] = jnp.zeros_like(ct_ref)

    blk = pl.program_id(0) * steps_per_par + k

    # Skip clamped duplicate / overhang grid steps entirely.
    @pl.when(blk < nblocks)
    def _():
        pred = pred_ref[...].astype(jnp.float32)          # (tile_p, L)
        true = true_ref[...].astype(jnp.float32)
        tp, L = pred.shape

        # Streaming segmented reductions over the d classes of each row.
        # shifted_j[l] = x[l + j]  ->  results valid at class-0 lanes (lane % d == 0).
        m = pred                        # running max of pred over the row window
        s = jnp.ones_like(pred)         # running sum of exp(pred - m)
        best_t = true                   # running max of true (first-max tie-break)
        best_p = pred                   # pred at running argmax(true)
        any_nz = true != 0.0

        for j in range(1, d):
            shift = (L - j) if roll_like_jnp else j      # realize x[l + j]
            pj = pltpu.roll(pred, shift, axis=1)
            tj = pltpu.roll(true, shift, axis=1)
            # numerically-stable streaming logsumexp (single exp per step)
            hi = jnp.maximum(m, pj)
            lo = jnp.minimum(m, pj)
            e = jnp.exp(lo - hi)
            s = jnp.where(pj >= m, s * e + 1.0, s + e)
            m = hi
            # first-argmax of `true` within the row, carrying pred along
            take = tj > best_t
            best_t = jnp.where(take, tj, best_t)
            best_p = jnp.where(take, pj, best_p)
            any_nz = jnp.logical_or(any_nz, tj != 0.0)

        lse = m + jnp.log(s)            # per-row logsumexp (valid at class-0 lanes)

        # Row / lane validity (computed after the loop to keep live VMEM low).
        lane = jax.lax.broadcasted_iota(jnp.int32, (tp, L), 1)
        sub = jax.lax.broadcasted_iota(jnp.int32, (tp, L), 0)
        is_c0 = (lane % d) == 0
        row_id = (blk * tile_p + sub) * rpp + lane // d
        keep = is_c0 & (row_id < n_rows) & any_nz

        # jnp.where (select) so unspecified overhang data can never leak NaN/Inf.
        ce = jnp.where(keep, lse - best_p, 0.0)
        cnt = keep.astype(jnp.float32)

        ce_ref[...] += ce               # dense elementwise accumulation
        ct_ref[...] += cnt


def masked_mean_ce(pred, true, *, buf_bytes=1 << 20):
    """Mean cross-entropy over rows kept by the `any(true != 0)` mask (Pallas TPU)."""
    rows, d = pred.shape
    assert true.shape == (rows, d)
    assert rows > 0 and d >= 1

    g = math.gcd(d, 128)
    rpp = 128 // g                      # logical rows per packed row
    L = rpp * d                         # packed lane width (multiple of 128)

    # Free contiguous reshape into the lane-dense layout; pad rows only if needed
    # for the reshape (padded rows are all-zero -> excluded by the mask anyway).
    rows_p = _round_up(rows, rpp)
    if rows_p != rows:
        pad = rows_p - rows
        pred = jnp.pad(pred, ((0, pad), (0, 0)))
        true = jnp.pad(true, ((0, pad), (0, 0)))
    P = rows_p // rpp
    pred2 = pred.reshape(P, L)
    true2 = true.reshape(P, L)

    # Tile sizing: ~buf_bytes per input buffer, even split across blocks.
    itemsize = max(jnp.dtype(pred2.dtype).itemsize, jnp.dtype(true2.dtype).itemsize)
    tile_cap = max(8, ((buf_bytes // (L * itemsize)) // 8) * 8)
    nb = pl.cdiv(P, tile_cap)
    tile_p = _round_up(pl.cdiv(P, nb), 8)
    nblocks = pl.cdiv(P, tile_p)

    n_par = 2 if nblocks >= 8 else 1    # megacore split only when worthwhile
    spp = pl.cdiv(nblocks, n_par)

    kernel = functools.partial(
        _masked_ce_kernel, n_rows=rows, d=d, rpp=rpp, tile_p=tile_p,
        nblocks=nblocks, steps_per_par=spp, roll_like_jnp=_roll_like_jnp())

    def in_map(p, k):
        # Clamp so duplicate / overhang steps still map to a real block; their
        # compute is skipped in-kernel via pl.when.
        return (jnp.minimum(p * spp + k, nblocks - 1), 0)

    out_ce, out_ct = pl.pallas_call(
        kernel,
        out_shape=(jax.ShapeDtypeStruct((n_par * tile_p, L), jnp.float32),
                   jax.ShapeDtypeStruct((n_par * tile_p, L), jnp.float32)),
        grid_spec=pltpu.PrefetchScalarGridSpec(
            num_scalar_prefetch=0,
            grid=(n_par, spp),
            in_specs=[pl.BlockSpec((tile_p, L), in_map),
                      pl.BlockSpec((tile_p, L), in_map)],
            out_specs=[pl.BlockSpec((tile_p, L), lambda p, k: (p, 0)),
                       pl.BlockSpec((tile_p, L), lambda p, k: (p, 0))],
        ),
        compiler_params=pltpu.CompilerParams(
            dimension_semantics=("parallel", "arbitrary"),
            vmem_limit_bytes=32 * 1024 * 1024),
    )(pred2, true2)

    ce_sum = jnp.sum(out_ce)
    cnt = jnp.sum(out_ct)
    # NOTE: all-masked input -> 0.0 (torch reference would produce NaN/inf).
    return jnp.where(cnt > 0, ce_sum / cnt, 0.0)


# ---------------------------------------------------------------------------
# Plain-XLA mean CE for the tiny (bs, dy) y-loss (a kernel launch is pure overhead).
# ---------------------------------------------------------------------------
def plain_mean_ce(pred, true):
    pred = pred.astype(jnp.float32)
    tgt = jnp.argmax(true, axis=-1)
    lse = jax.scipy.special.logsumexp(pred, axis=-1)
    pat = jnp.take_along_axis(pred, tgt[:, None], axis=1)[:, 0]
    return jnp.mean(lse - pat)


# ---------------------------------------------------------------------------
# TrainLossDiscrete.forward equivalent
# ---------------------------------------------------------------------------
def train_loss_discrete(masked_pred_X, masked_pred_E, pred_y,
                        true_X, true_E, true_y, lambda_train):
    # TODO(synk): running-metric state (compute_metrics / reset) is not modeled; forward only.
    dx = true_X.shape[-1]
    de = true_E.shape[-1]

    loss_X = (masked_mean_ce(masked_pred_X.reshape(-1, dx), true_X.reshape(-1, dx))
              if true_X.size > 0 else 0.0)
    loss_E = (masked_mean_ce(masked_pred_E.reshape(-1, de), true_E.reshape(-1, de))
              if true_E.size > 0 else 0.0)
    loss_y = plain_mean_ce(pred_y, true_y) if true_y.size > 0 else 0.0
    return loss_X + lambda_train[0] * loss_E + lambda_train[1] * loss_y


# ---------------------------------------------------------------------------
# Pure-JAX reference for verification
# ---------------------------------------------------------------------------
def _ref_masked_mean_ce(pred, true, apply_mask):
    pred = pred.astype(jnp.float32)
    true = true.astype(jnp.float32)
    if apply_mask:
        mask = jnp.any(true != 0.0, axis=-1)
    else:
        mask = jnp.ones(pred.shape[0], dtype=bool)
    tgt = jnp.argmax(true, axis=-1)
    lse = jax.scipy.special.logsumexp(pred, axis=-1)
    pat = jnp.take_along_axis(pred, tgt[:, None], axis=1)[:, 0]
    ce = lse - pat
    return jnp.sum(jnp.where(mask, ce, 0.0)) / jnp.sum(mask)


def _ref_loss(masked_pred_X, masked_pred_E, pred_y, true_X, true_E, true_y, lam):
    dx, de = true_X.shape[-1], true_E.shape[-1]
    lx = _ref_masked_mean_ce(masked_pred_X.reshape(-1, dx), true_X.reshape(-1, dx), True)
    le = _ref_masked_mean_ce(masked_pred_E.reshape(-1, de), true_E.reshape(-1, de), True)
    ly = _ref_masked_mean_ce(pred_y, true_y, False)
    return lx + lam[0] * le + lam[1] * ly


if __name__ == "__main__":
    key = jax.random.PRNGKey(0)
    bs, n, dx, de, dy = 2, 8, 5, 4, 3
    lambda_train = (5.0, 0.1)   # deterministic "parameter" from __init__

    kx, ke, ky, kpx, kpe, kpy, kmx = jax.random.split(key, 7)

    # one-hot ground truths; some node/edge rows zeroed out (masked entries)
    node_labels = jax.random.randint(kx, (bs, n), 0, dx)
    true_X = jax.nn.one_hot(node_labels, dx, dtype=jnp.float32)
    node_keep = jax.random.bernoulli(kmx, 0.75, (bs, n)).astype(jnp.float32)
    true_X = true_X * node_keep[..., None]

    edge_labels = jax.random.randint(ke, (bs, n, n), 0, de)
    true_E = jax.nn.one_hot(edge_labels, de, dtype=jnp.float32)
    edge_keep = (node_keep[:, :, None] * node_keep[:, None, :])
    true_E = true_E * edge_keep[..., None]

    y_labels = jax.random.randint(ky, (bs,), 0, dy)
    true_y = jax.nn.one_hot(y_labels, dy, dtype=jnp.float32)

    masked_pred_X = jax.random.normal(kpx, (bs, n, dx), dtype=jnp.float32)
    masked_pred_E = jax.random.normal(kpe, (bs, n, n, de), dtype=jnp.float32)
    pred_y = jax.random.normal(kpy, (bs, dy), dtype=jnp.float32)

    loss = train_loss_discrete(masked_pred_X, masked_pred_E, pred_y,
                               true_X, true_E, true_y, lambda_train)
    loss = jax.block_until_ready(loss)

    ref = _ref_loss(masked_pred_X, masked_pred_E, pred_y,
                    true_X, true_E, true_y, lambda_train)
    assert jnp.allclose(loss, ref, rtol=1e-5, atol=1e-5), (loss, ref)

    print("KERNEL_OK")
</pallas_src>

<mosaic_0001>
module attributes {stable_mosaic.version = 11 : i64} {
  func.func @probe(%arg0: memref<8x128xf32, #tpu.memory_space<vmem>>, %arg1: memref<8x128xf32, #tpu.memory_space<vmem>>) attributes {dimension_semantics = [], scalar_prefetch = 0 : i64, scratch_operands = 0 : i64, tpu.core_type = #tpu.core_type<tc>} {
    %c0 = arith.constant 0 : index
    %c0_0 = arith.constant 0 : index
    %0 = vector.load %arg0[%c0, %c0_0] : memref<8x128xf32, #tpu.memory_space<vmem>>, vector<8x128xf32>
    %c1_i32 = arith.constant 1 : i32
    %1 = tpu.dynamic_rotate %0 by %c1_i32 dim 1 : vector<8x128xf32>, i32 -> vector<8x128xf32>
    %c0_1 = arith.constant 0 : index
    %c0_2 = arith.constant 0 : index
    %2 = vector.load %arg1[%c0_1, %c0_2] : memref<8x128xf32, #tpu.memory_space<vmem>>, vector<8x128xf32>
    tpu.vector_store %arg1[%c0_1, %c0_2], %1 {strides = array<i32>} : memref<8x128xf32, #tpu.memory_space<vmem>>, vector<8x128xf32>,
    return
  }
}

</mosaic_0001>

<bundles_post_ra>
// kernel: tpu_custom_call.1
= control target key start
LH: loop header
LB: loop body
LE: loop exit
PB: predicated region body
PF: predicated region fallthrough
CT: control target
= control target key end

     0   :  { %6 = vsyncpa [#allocation3], 0  ;;  %s118_s0 = inlined_call_operand.hbm [shape: f32[8,128], index: 0, kind: input, shape index: {}]   ;;  %s119_s1 = inlined_call_operand.hbm [shape: f32[8,128], index: 1, kind: output, shape index: {}]  }
   0x1   :  { %7 = vsyncpa [#allocation4], 0  ;;  %s13_s8 = sshll.u32 %s118_s0, 4  ;;  %s99_s9 = smov [#allocation2]   ;;  %s14_s8 = int_to_ptr.hbm [resolvable:$true] %s13_s8 }
   0x2   :  { %s15_s10 = sshll.u32 %s99_s9, 4  ;;  %s16_s10 = int_to_ptr.vmem [resolvable:$true] %s15_s10 }
   0x3   :  { %18 = dma.hbm_to_vmem [thread:$0]  %s14_s8, 128, %s16_s10, [#allocation3]  }
   0x4   :  { %95 = dma.done.wait [#allocation3], 128  }
   0x5   :  { %96 = vsyncadd [#allocation3], 4294967168  ;;  %v23_v0 = vld [vmem:[#allocation2] sm:$0xff]  ;;  %s100_s11 = smov 1   ;;  %s101_s12 = smov [#allocation5]  }
   0x6   :  { %24 = vrot.lane.b32.xlu0 %v23_v0, %s100_s11  ;;  %s32_s13 = sshll.u32 %s101_s12, 4  ;;  %s34_s16 = sshll.u32 %s119_s1, 4  ;;  %s33_s13 = int_to_ptr.vmem [resolvable:$true] %s32_s13  ;;  %s35_s16 = int_to_ptr.hbm [resolvable:$true] %s34_s16 }
  0x78   :  { %v25_v1 = vpop.permute.xlu0 %24 }
  0x79   :  { %26 = vst [vmem:[#allocation5] sm:$0xff] %v25_v1 }
  0x7a   :  { %37 = dma.vmem_to_hbm [thread:$0]  %s33_s13, 128, %s35_s16, [#allocation4]  }
  0x7b   :  { %97 = dma.done.wait [#allocation4], 128  }
  0x7c   :  { %98 = vsyncadd [#allocation4], 4294967168 }
  0x7d   :  { %42 = vsyncpa [#allocation3], 1 }
  0x7e   :  { %43 = vsyncpa [#allocation4], 1 }

</bundles_post_ra>
